<compile_context>
chip_gen: v6e
topology: v6e:2x2x1
jax: 0.10.0
libtpu: 0.0.40
codegen_flags: <defaults>
</compile_context>

<pallas_src>
import functools

import jax
import jax.numpy as jnp
import numpy as np
from jax.experimental import pallas as pl
from jax.experimental.pallas import tpu as pltpu


_LANES = 128            # vreg lane width
_CHUNK_ROWS = 8         # sublane rows processed per inner-loop chunk
_TILE_ROWS = 512        # default rows (of 128 lanes) per grid step = 65536 lanes
_VMEM_BUDGET = 6 << 20  # soft cap for the double-buffered input blocks


def _round_up(x, m):
    return (x + m - 1) // m * m


def _pick_tile_rows(num_rows, p_split, target_rows, bytes_per_row):
    """Rows-per-tile: multiple of 8, <= target, VMEM-bounded.

    Prefers an exact divisor of (num_rows / p_split) so no padding (and no
    wrapper-side pad copy) is needed for typical image sizes.
    """
    # Keep 2x (double buffer) of the score+label block under the VMEM budget.
    budget_rows = max(8, (_VMEM_BUDGET // (2 * bytes_per_row)) // 8 * 8)
    rows_per_core = pl.cdiv(num_rows, p_split)
    cap = min(target_rows, budget_rows, _round_up(rows_per_core, 8))
    cap = max(8, cap - cap % 8)
    if num_rows % p_split == 0:
        rpc = num_rows // p_split
        tr = cap
        floor = max(64, cap // 4)
        while tr >= floor:
            if rpc % tr == 0:
                return tr
            tr -= 8
    return cap


def _dice_partials_kernel(score_ref, labels_ref, out_ref, *,
                          n_valid, apply_softmax, need_mask):
    # score_ref : (1, C, TR, 128)      predictions, native dtype (f32 / bf16)
    # labels_ref: (1, TR, 128)         int32 class ids (-1 in padded lanes)
    # out_ref   : (1, 1, 3C, 8, 128)   f32 partials [intersect; z_sum; y_sum];
    #             block index depends only on (b, p) so it stays resident in
    #             VMEM across the reduction (t) axis and acts as accumulator.
    t = pl.program_id(2)

    @pl.when(t == 0)
    def _init():
        out_ref[...] = jnp.zeros_like(out_ref)

    c = score_ref.shape[1]
    tr = score_ref.shape[2]
    n_chunks = tr // _CHUNK_ROWS

    # Hoisted broadcasts (JAX does not CSE broadcast_in_dim inside the loop).
    class_iota = jax.lax.broadcasted_iota(jnp.int32, (c, _CHUNK_ROWS, _LANES), 0)
    if need_mask:
        p = pl.program_id(1)
        base = (p * pl.num_programs(2) + t) * tr * _LANES
        pos0 = (jax.lax.broadcasted_iota(jnp.int32, (_CHUNK_ROWS, _LANES), 0) * _LANES
                + jax.lax.broadcasted_iota(jnp.int32, (_CHUNK_ROWS, _LANES), 1))

    acc_i = jnp.zeros((c, _CHUNK_ROWS, _LANES), jnp.float32)
    acc_z = jnp.zeros((c, _CHUNK_ROWS, _LANES), jnp.float32)
    acc_y = jnp.zeros((c, _CHUNK_ROWS, _LANES), jnp.float32)

    # Chunked inner loop over the VMEM tile: static 8-row slices, small live set.
    for j in range(n_chunks):
        r0 = j * _CHUNK_ROWS
        s = score_ref[0, :, r0:r0 + _CHUNK_ROWS, :].astype(jnp.float32)  # (C,8,128)

        if apply_softmax:
            # Softmax over the class axis == leading dim -> pure VPU ops;
            # the divide becomes an EUP approximate reciprocal.
            m = jnp.max(s, axis=0, keepdims=True)
            e = jnp.exp(s - m)
            denom = jnp.sum(e, axis=0, keepdims=True)
            s = e * pl.reciprocal(denom, approx=True)

        if need_mask:
            # SELECT (not multiply) after softmax so padded-column values are
            # discarded exactly (traced only when softmax AND padding exist).
            valid = (base + r0 * _LANES + pos0) < n_valid                # (8,128)
            s = jnp.where(valid[None], s, 0.0)

        lab = labels_ref[0, r0:r0 + _CHUNK_ROWS, :]                      # (8,128)
        onehot = (lab[None] == class_iota).astype(jnp.float32)           # (C,8,128)

        acc_i = acc_i + s * onehot       # intersect
        acc_z = acc_z + s * s            # z_sum
        acc_y = acc_y + onehot           # y_sum (onehot^2 == onehot)

    out_ref[0, 0, 0:c] += acc_i
    out_ref[0, 0, c:2 * c] += acc_z
    out_ref[0, 0, 2 * c:3 * c] += acc_y


def dice_loss(inputs, target, weight=None, softmax=False, n_classes=None,
              tile_rows=_TILE_ROWS, core_split=2):
    """Pallas TPU DiceLoss.forward.

    inputs: (B, C, H, W) predictions (native dtype is kept on the wire)
    target: (B, 1, H, W) or (B, H, W) integer class labels in [0, C)
    """
    B, C, H, W = inputs.shape
    if n_classes is None:
        n_classes = C
    assert n_classes == C, "predict & target shape do not match"
    HW = H * W

    num_rows = pl.cdiv(HW, _LANES)                      # 128-lane rows per (b, c)
    P = core_split if num_rows >= 2 * _CHUNK_ROWS else 1
    bytes_per_row = C * _LANES * inputs.dtype.itemsize + _LANES * 4
    TR = _pick_tile_rows(num_rows, P, tile_rows, bytes_per_row)
    T = pl.cdiv(num_rows, P * TR)
    R_pad = P * T * TR
    HW_pad = R_pad * _LANES

    # Free reshapes in the aligned case; one-time pad otherwise (score -> 0,
    # labels -> -1 so padding contributes nothing to any sum without softmax).
    score = inputs.reshape(B, C, HW)
    labels = target.reshape(B, HW).astype(jnp.int32)
    if HW_pad != HW:
        score = jnp.pad(score, ((0, 0), (0, 0), (0, HW_pad - HW)))
        labels = jnp.pad(labels, ((0, 0), (0, HW_pad - HW)), constant_values=-1)
    score = score.reshape(B, C, R_pad, _LANES)
    labels = labels.reshape(B, R_pad, _LANES)

    need_mask = bool(softmax) and (HW_pad != HW)

    kernel = functools.partial(
        _dice_partials_kernel, n_valid=HW,
        apply_softmax=bool(softmax), need_mask=need_mask)

    parts = pl.pallas_call(
        kernel,
        out_shape=jax.ShapeDtypeStruct((B, P, 3 * C, _CHUNK_ROWS, _LANES),
                                       jnp.float32),
        grid=(B, P, T),
        in_specs=[
            pl.BlockSpec((1, C, TR, _LANES),
                         lambda b, p, t: (b, 0, p * T + t, 0)),
            pl.BlockSpec((1, TR, _LANES),
                         lambda b, p, t: (b, p * T + t, 0)),
        ],
        out_specs=pl.BlockSpec((1, 1, 3 * C, _CHUNK_ROWS, _LANES),
                               lambda b, p, t: (b, p, 0, 0, 0)),
        compiler_params=pltpu.CompilerParams(
            dimension_semantics=("parallel", "parallel", "arbitrary")),
    )(score, labels)

    # Tiny finalize in the wrapper: cross-lane/core/batch reduce + dice combine.
    sums = jnp.sum(parts, axis=(0, 1, 3, 4), dtype=jnp.float32)   # (3C,)
    intersect = sums[:C]
    z_sum = sums[C:2 * C]
    y_sum = sums[2 * C:]

    if weight is None:
        weight = [1.0] * n_classes
    w = jnp.asarray(weight, dtype=jnp.float32)

    smooth = 1e-5
    dice = 1.0 - (2.0 * intersect + smooth) / (z_sum + y_sum + smooth)
    return jnp.sum(dice * w) / jnp.float32(n_classes)


def dice_loss_ref(inputs, target, weight=None, softmax=False):
    """Pure-JAX reference matching the PyTorch module semantics."""
    n = inputs.shape[1]
    if softmax:
        inputs = jax.nn.softmax(inputs.astype(jnp.float32), axis=1)
    onehot = jnp.concatenate(
        [(target == i).astype(jnp.float32) for i in range(n)], axis=1)
    if weight is None:
        weight = [1.0] * n
    smooth = 1e-5
    loss = 0.0
    for i in range(n):
        s = inputs[:, i].astype(jnp.float32)
        t = onehot[:, i]
        intersect = jnp.sum(s * t)
        y_sum = jnp.sum(t * t)
        z_sum = jnp.sum(s * s)
        d = 1.0 - (2.0 * intersect + smooth) / (z_sum + y_sum + smooth)
        loss = loss + d * weight[i]
    return loss / n


if __name__ == "__main__":
    key = jax.random.PRNGKey(0)
    k1, k2 = jax.random.split(key)

    # Base path (softmax=False, weight=None), like DiceLoss(4)(inputs, target).
    B, C, H, W = 2, 4, 16, 16
    inputs = jax.random.uniform(k1, (B, C, H, W), dtype=jnp.float32)
    target = jax.random.randint(k2, (B, 1, H, W), 0, C).astype(jnp.int32)
    loss = jax.block_until_ready(dice_loss(inputs, target, n_classes=C))
    ref = jax.block_until_ready(dice_loss_ref(inputs, target))
    np.testing.assert_allclose(np.asarray(loss), np.asarray(ref),
                               rtol=1e-5, atol=1e-6)

    # softmax=True + per-class weights + spatial size not a multiple of 128:
    # exercises the one-time wrapper pad and the in-kernel tail mask.
    wts = [1.0, 0.5, 2.0, 1.5]
    H2, W2 = 20, 20
    inputs2 = jax.random.normal(k1, (B, C, H2, W2), dtype=jnp.float32)
    target2 = jax.random.randint(k2, (B, 1, H2, W2), 0, C).astype(jnp.int32)
    loss2 = jax.block_until_ready(
        dice_loss(inputs2, target2, weight=wts, softmax=True, n_classes=C))
    ref2 = jax.block_until_ready(
        dice_loss_ref(inputs2, target2, weight=wts, softmax=True))
    np.testing.assert_allclose(np.asarray(loss2), np.asarray(ref2),
                               rtol=2e-3, atol=2e-3)

    # Multi-tile + dual-core split path with bf16 logits: grid (B, P=2, T=4),
    # exercising accumulator init / resident accumulation across the t axis.
    H3 = W3 = 128
    inputs3 = jax.random.uniform(k1, (B, C, H3, W3), dtype=jnp.bfloat16)
    target3 = jax.random.randint(k2, (B, 1, H3, W3), 0, C).astype(jnp.int32)
    loss3 = jax.block_until_ready(
        dice_loss(inputs3, target3, n_classes=C, tile_rows=16))
    ref3 = jax.block_until_ready(dice_loss_ref(inputs3, target3))
    np.testing.assert_allclose(np.asarray(loss3), np.asarray(ref3),
                               rtol=2e-3, atol=2e-3)

    print("KERNEL_OK")
</pallas_src>

<mosaic_0001>
module attributes {stable_mosaic.version = 11 : i64} {
  func.func @_dice_partials_kernel(%arg0: i32, %arg1: i32, %arg2: i32, %arg3: memref<1x4x8x128xf32, #tpu.memory_space<vmem>>, %arg4: memref<1x8x128xi32, #tpu.memory_space<vmem>>, %arg5: memref<1x1x12x8x128xf32, #tpu.memory_space<vmem>>) attributes {dimension_semantics = [#tpu.dimension_semantics<parallel>, #tpu.dimension_semantics<parallel>, #tpu.dimension_semantics<arbitrary>], iteration_bounds = array<i64: 2, 1, 1>, scalar_prefetch = 0 : i64, scratch_operands = 0 : i64, tpu.core_type = #tpu.core_type<tc>, window_params = [{transform_indices = @transform_0, window_bounds = array<i64: 1, 4, 8, 128>}, {transform_indices = @transform_1, window_bounds = array<i64: 1, 8, 128>}, {transform_indices = @transform_2, window_bounds = array<i64: 1, 1, 12, 8, 128>}]} {
    %c0_i32 = arith.constant 0 : i32
    %0 = arith.cmpi eq, %arg2, %c0_i32 : i32
    %1 = arith.extui %0 : i1 to i32
    %c0_i32_0 = arith.constant 0 : i32
    %2 = arith.cmpi ne, %1, %c0_i32_0 : i32
    scf.if %2 {
      %cst_37 = arith.constant 0.000000e+00 : f32
      %39 = vector.broadcast %cst_37 : f32 to vector<1x1x12x8x128xf32>
      %c0_38 = arith.constant 0 : index
      %c0_39 = arith.constant 0 : index
      %c0_40 = arith.constant 0 : index
      %c0_41 = arith.constant 0 : index
      %c0_42 = arith.constant 0 : index
      %40 = vector.load %arg5[%c0_38, %c0_39, %c0_40, %c0_41, %c0_42] : memref<1x1x12x8x128xf32, #tpu.memory_space<vmem>>, vector<1x1x12x8x128xf32>
      tpu.vector_store %arg5[%c0_38, %c0_39, %c0_40, %c0_41, %c0_42], %39 {strides = array<i32>} : memref<1x1x12x8x128xf32, #tpu.memory_space<vmem>>, vector<1x1x12x8x128xf32>,
    } else {
    }
    %3 = tpu.iota {dimensions = array<i32: 0>} : vector<4x8x128xi32>
    %cst = arith.constant 0.000000e+00 : f32
    %4 = vector.broadcast %cst : f32 to vector<4x8x128xf32>
    %cst_1 = arith.constant 0.000000e+00 : f32
    %5 = vector.broadcast %cst_1 : f32 to vector<4x8x128xf32>
    %cst_2 = arith.constant 0.000000e+00 : f32
    %6 = vector.broadcast %cst_2 : f32 to vector<4x8x128xf32>
    %c0 = arith.constant 0 : index
    %c0_3 = arith.constant 0 : index
    %c0_4 = arith.constant 0 : index
    %c0_5 = arith.constant 0 : index
    %7 = vector.load %arg3[%c0, %c0_3, %c0_4, %c0_5] : memref<1x4x8x128xf32, #tpu.memory_space<vmem>>, vector<1x4x8x128xf32>
    %8 = vector.shape_cast %7 : vector<1x4x8x128xf32> to vector<4x8x128xf32>
    %c0_6 = arith.constant 0 : index
    %c0_7 = arith.constant 0 : index
    %c0_8 = arith.constant 0 : index
    %9 = vector.load %arg4[%c0_6, %c0_7, %c0_8] : memref<1x8x128xi32, #tpu.memory_space<vmem>>, vector<1x8x128xi32>
    %10 = vector.shape_cast %9 : vector<1x8x128xi32> to vector<8x128xi32>
    %11 = vector.shape_cast %10 : vector<8x128xi32> to vector<1x8x128xi32>
    %12 = vector.broadcast %11 : vector<1x8x128xi32> to vector<4x8x128xi32>
    %13 = arith.cmpi eq, %12, %3 : vector<4x8x128xi32>
    %14 = arith.extui %13 : vector<4x8x128xi1> to vector<4x8x128xi32>
    %15 = arith.sitofp %14 : vector<4x8x128xi32> to vector<4x8x128xf32>
    %16 = arith.mulf %8, %15 : vector<4x8x128xf32>
    %17 = arith.addf %4, %16 : vector<4x8x128xf32>
    %18 = arith.mulf %8, %8 : vector<4x8x128xf32>
    %19 = arith.addf %5, %18 : vector<4x8x128xf32>
    %20 = arith.addf %6, %15 : vector<4x8x128xf32>
    %c0_9 = arith.constant 0 : index
    %c0_10 = arith.constant 0 : index
    %c0_11 = arith.constant 0 : index
    %c0_12 = arith.constant 0 : index
    %c0_13 = arith.constant 0 : index
    %21 = vector.load %arg5[%c0_9, %c0_10, %c0_11, %c0_12, %c0_13] : memref<1x1x12x8x128xf32, #tpu.memory_space<vmem>>, vector<1x1x4x8x128xf32>
    %22 = vector.shape_cast %21 : vector<1x1x4x8x128xf32> to vector<4x8x128xf32>
    %23 = arith.addf %22, %17 : vector<4x8x128xf32>
    %c0_14 = arith.constant 0 : index
    %c0_15 = arith.constant 0 : index
    %c0_16 = arith.constant 0 : index
    %c0_17 = arith.constant 0 : index
    %c0_18 = arith.constant 0 : index
    %24 = vector.load %arg5[%c0_14, %c0_15, %c0_16, %c0_17, %c0_18] : memref<1x1x12x8x128xf32, #tpu.memory_space<vmem>>, vector<1x1x4x8x128xf32>
    %25 = vector.shape_cast %24 : vector<1x1x4x8x128xf32> to vector<4x8x128xf32>
    %26 = vector.shape_cast %23 : vector<4x8x128xf32> to vector<1x1x4x8x128xf32>
    tpu.vector_store %arg5[%c0_14, %c0_15, %c0_16, %c0_17, %c0_18], %26 {strides = array<i32>} : memref<1x1x12x8x128xf32, #tpu.memory_space<vmem>>, vector<1x1x4x8x128xf32>,
    %c0_19 = arith.constant 0 : index
    %c0_20 = arith.constant 0 : index
    %c4 = arith.constant 4 : index
    %c0_21 = arith.constant 0 : index
    %c0_22 = arith.constant 0 : index
    %27 = vector.load %arg5[%c0_19, %c0_20, %c4, %c0_21, %c0_22] : memref<1x1x12x8x128xf32, #tpu.memory_space<vmem>>, vector<1x1x4x8x128xf32>
    %28 = vector.shape_cast %27 : vector<1x1x4x8x128xf32> to vector<4x8x128xf32>
    %29 = arith.addf %28, %19 : vector<4x8x128xf32>
    %c0_23 = arith.constant 0 : index
    %c0_24 = arith.constant 0 : index
    %c4_25 = arith.constant 4 : index
    %c0_26 = arith.constant 0 : index
    %c0_27 = arith.constant 0 : index
    %30 = vector.load %arg5[%c0_23, %c0_24, %c4_25, %c0_26, %c0_27] : memref<1x1x12x8x128xf32, #tpu.memory_space<vmem>>, vector<1x1x4x8x128xf32>
    %31 = vector.shape_cast %30 : vector<1x1x4x8x128xf32> to vector<4x8x128xf32>
    %32 = vector.shape_cast %29 : vector<4x8x128xf32> to vector<1x1x4x8x128xf32>
    tpu.vector_store %arg5[%c0_23, %c0_24, %c4_25, %c0_26, %c0_27], %32 {strides = array<i32>} : memref<1x1x12x8x128xf32, #tpu.memory_space<vmem>>, vector<1x1x4x8x128xf32>,
    %c0_28 = arith.constant 0 : index
    %c0_29 = arith.constant 0 : index
    %c8 = arith.constant 8 : index
    %c0_30 = arith.constant 0 : index
    %c0_31 = arith.constant 0 : index
    %33 = vector.load %arg5[%c0_28, %c0_29, %c8, %c0_30, %c0_31] : memref<1x1x12x8x128xf32, #tpu.memory_space<vmem>>, vector<1x1x4x8x128xf32>
    %34 = vector.shape_cast %33 : vector<1x1x4x8x128xf32> to vector<4x8x128xf32>
    %35 = arith.addf %34, %20 : vector<4x8x128xf32>
    %c0_32 = arith.constant 0 : index
    %c0_33 = arith.constant 0 : index
    %c8_34 = arith.constant 8 : index
    %c0_35 = arith.constant 0 : index
    %c0_36 = arith.constant 0 : index
    %36 = vector.load %arg5[%c0_32, %c0_33, %c8_34, %c0_35, %c0_36] : memref<1x1x12x8x128xf32, #tpu.memory_space<vmem>>, vector<1x1x4x8x128xf32>
    %37 = vector.shape_cast %36 : vector<1x1x4x8x128xf32> to vector<4x8x128xf32>
    %38 = vector.shape_cast %35 : vector<4x8x128xf32> to vector<1x1x4x8x128xf32>
    tpu.vector_store %arg5[%c0_32, %c0_33, %c8_34, %c0_35, %c0_36], %38 {strides = array<i32>} : memref<1x1x12x8x128xf32, #tpu.memory_space<vmem>>, vector<1x1x4x8x128xf32>,
    return
  }
  func.func @transform_0(%arg0: i32, %arg1: i32, %arg2: i32) -> (i32, i32, i32, i32) {
    %c1_i32 = arith.constant 1 : i32
    %0 = arith.muli %arg1, %c1_i32 : i32
    %1 = arith.addi %0, %arg2 : i32
    %c0_i32 = arith.constant 0 : i32
    %c0_i32_0 = arith.constant 0 : i32
    %c0_i32_1 = arith.constant 0 : i32
    return %arg0, %c0_i32, %1, %c0_i32_0 : i32, i32, i32, i32
  }
  func.func @transform_1(%arg0: i32, %arg1: i32, %arg2: i32) -> (i32, i32, i32) {
    %c1_i32 = arith.constant 1 : i32
    %0 = arith.muli %arg1, %c1_i32 : i32
    %1 = arith.addi %0, %arg2 : i32
    %c0_i32 = arith.constant 0 : i32
    %c0_i32_0 = arith.constant 0 : i32
    return %arg0, %1, %c0_i32 : i32, i32, i32
  }
  func.func @transform_2(%arg0: i32, %arg1: i32, %arg2: i32) -> (i32, i32, i32, i32, i32) {
    %c0_i32 = arith.constant 0 : i32
    %c0_i32_0 = arith.constant 0 : i32
    %c0_i32_1 = arith.constant 0 : i32
    %c0_i32_2 = arith.constant 0 : i32
    return %arg0, %arg1, %c0_i32, %c0_i32_0, %c0_i32_1 : i32, i32, i32, i32, i32
  }
}

</mosaic_0001>

<bundles_post_ra>
// kernel: tpu_custom_call.1
= control target key start
LH: loop header
LB: loop body
LE: loop exit
PB: predicated region body
PF: predicated region fallthrough
CT: control target
= control target key end

     0   :  { %7 = vsyncpa [#allocation3], 0  ;;  %s908_s0 = inlined_call_operand.hbm [shape: f32[2,4,8,128], index: 0, kind: input, shape index: {}]   ;;  %s909_s1 = inlined_call_operand.hbm [shape: s32[2,8,128], index: 1, kind: input, shape index: {}]   ;;  %s910_s2 = inlined_call_operand.hbm [shape: f32[2,1,12,8,128], index: 2, kind: output, shape index: {}]  }
   0x1   :  { %9 = vsyncpa [#allocation3 + $0x1], 0 }
   0x2   :  { %10 = vsyncpa [#allocation6], 0 }
   0x3   :  { %12 = vsyncpa [#allocation6 + $0x1], 0 }
   0x4   :  { %13 = vsyncpa [#allocation4], 0 }
   0x5   :  { %15 = vsyncpa [#allocation4 + $0x1], 0  ;;  %s731_s9 = smov 0   ;;  %s733_s10 = smov 0  }
   0x6   :  { %s735_s11 = smov 0   ;;  %s737_s12 = smov 0  }
   0x7   :  { %s739_s13 = smov 0   ;;  %s741_s14 = smov 0  }
   0x8 LB: > { %s456_s15 = sadd.s32 4294967295, %s706_s14   ;;  %s457_s16 = sadd.s32 4294967294, %s706_s14   ;;  %s706_s14 = sphi %s741_s14, %s21_s14   ;;  %s702_s13 = sphi %s739_s13, %s921_s13   ;;  %s698_s12 = sphi %s737_s12, %s920_s12   ;;  %s694_s11 = sphi %s735_s11, %s919_s11   ;;  %s690_s10 = sphi %s733_s10, %s918_s10   ;;  %s686_s9 = sphi %s731_s9, %s917_s9  }
   0x9   : > { %s40_s17 = sadd.s32 1, %s702_s13  ;;  %s51_s18 = sadd.s32 1, %s694_s11 }
   0xa   : > { %p42_p0 = scmp.ge.s32.totalorder %s40_s17, 2  ;;  %p58_p1 = scmp.ne.s32.totalorder %s694_s11, %s690_s10 }
   0xb   : > { %p59_p2 = scmp.eq.s32.totalorder %s706_s14, 0  ;;  %p64_p3 = scmp.ne.s32.totalorder %s690_s10, %s686_s9 }
   0xc   : > { %s923_s17 = smov (%p42_p0, %s40_s17), 0  ;;  %p65_p5 = scmp.eq.s32.totalorder %s456_s15, 0 }
   0xd   : > { %p772_p4 = por %p59_p2, %p58_p1  ;;  %s46_s20 = ssub.s32 %s702_s13, %s923_s17 }
   0xe   : > { %p120_p6 = scmp.eq.s32.totalorder %s456_s15, 1  ;;  %p49_p7 = scmp.eq.s32.totalorder %s46_s20, 0 }
   0xf   : > { %p778_p8 = por %p65_p5, %p64_p3  ;;  %p126_p10 = scmp.eq.s32.totalorder %s457_s16, 1 }
  0x10   : > { %p782_p9 = por %p120_p6, %p58_p1  ;;  %p459_p12 = scmp.ge.s32.totalorder %s706_s14, 2 }
  0x11   : > { %s787_s23 = scalar_select %p49_p7, %s694_s11, %s51_s18  }
  0x12   : > { %p789_p11 = por %p126_p10, %p64_p3  ;;  %p511_p13 = scmp.lt.s32.totalorder %s706_s14, 2 }
  0x13   : > { %s796_s25 = sand.u32 1, %s694_s11   ;;  %s491_s27 = sshll.u32 %s702_s13, 9 }
  0x14   : > { %s460_s26 = sshll.u32 %s796_s25, 5  ;;  %s158_s30 = scalar_lea.hbm %s908_s0, %s491_s27 }
  0x15   : > { %s150_s3 = scalar_lea.vmem [#allocation2], %s460_s26  ;;  %p805_p0 = pnand %p511_p13, %p772_p4 }
  0x16   : > { %s159_s4 = sshll.u32 %s150_s3, 4  ;;  %p465_p1 = scmp.ge.s32.totalorder %s706_s14, 1  ;;  %s160_s4 = int_to_ptr.vmem [resolvable:$true] %s159_s4 }
  0x17   : > { %s147_s6 = scalar_lea.sflag [#allocation3], %s796_s25  ;;  %p568_p2 = pneg %p805_p0 }
  0x18   : > { %s579_s7 = scalar_lea.vmem %s160_s4, 512  ;;  %s708_s8 = smov [#allocation2]  }
  0x19   : > { %p580_p3 = scmp.ne.s32.totalorder %s160_s4, %s579_s7  ;;  %s584_s15 = sshll.u32 %s708_s8, 4  ;;  %s585_s15 = int_to_ptr.vmem [resolvable:$false] %s584_s15 }
  0x1a   : > { %s586_s16 = scalar_lea.vmem %s585_s15, 1024  ;;  %p587_p4 = scmp.lt.s32.totalorder %s160_s4, %s585_s15 }
  0x1b   : > { %p582_p5 = pnand %p580_p3, %p568_p2  ;;  %p588_p7 = scmp.lt.s32.totalorder %s586_s16, %s579_s7 }
  0x1d   : > { %p583_p6 = pneg %p582_p5  ;;  %p589_p10 = por %p588_p7, %p587_p4 }
  0x1f   : > { %p590_p13 = pnand %p589_p10, %p583_p6 }
  0x21   : > { %593 = shalt.err (!%p590_p13)
}
  0x22   : > { %s709_s18 = smov 128   ;;  %s710_s19 = smov 8  }
  0x23   : > { %503 = dma.hbm_to_vmem [thread:$0]  (!%p805_p0), %s158_s30, 512, %s160_s4, %s147_s6, %s709_s18, %s709_s18, %s710_s19  }
  0x24   : > { %p187_p3 = scmp.lt.s32.totalorder %s706_s14, 3  ;;  %s463_s20 = sshll.u32 %s796_s25, 3 }
  0x25   : > { %s464_s26 = sshll.u32 %s702_s13, 7  ;;  %s173_s7 = scalar_lea.vmem [#allocation5], %s463_s20 }
  0x26   : > { %p823_p5 = pnand %p465_p1, %p187_p3  ;;  %s180_s3 = scalar_lea.hbm %s909_s1, %s464_s26 }
  0x27   : > { %s182_s8 = sshll.u32 %s173_s7, 4  ;;  %s170_s15 = scalar_lea.sflag [#allocation6], %s796_s25  ;;  %s183_s8 = int_to_ptr.vmem [resolvable:$true] %s182_s8 }
  0x28   : > { %s607_s16 = scalar_lea.vmem %s183_s8, 128  ;;  %s711_s30 = smov [#allocation5]  }
  0x29   : > { %p608_p6 = scmp.ne.s32.totalorder %s183_s8, %s607_s16  ;;  %s612_s4 = sshll.u32 %s711_s30, 4  ;;  %s613_s4 = int_to_ptr.vmem [resolvable:$false] %s612_s4 }
  0x2a   : > { %s614_s6 = scalar_lea.vmem %s613_s4, 256  ;;  %p615_p1 = scmp.lt.s32.totalorder %s183_s8, %s613_s4 }
  0x2b   : > { %p610_p4 = pnand %p608_p6, %p568_p2  ;;  %p616_p10 = scmp.lt.s32.totalorder %s614_s6, %s607_s16 }
  0x2d   : > { %p611_p7 = pneg %p610_p4  ;;  %p617_p13 = por %p616_p10, %p615_p1 }
  0x2f   : > { %p618_p3 = pnand %p617_p13, %p611_p7 }
  0x31   : > { %621 = shalt.err (!%p618_p3)
}
  0x32   : > { %506 = dma.hbm_to_vmem [thread:$0]  (!%p805_p0), %s180_s3, 128, %s183_s8, %s170_s15  }
  0x33   : > { %191 = sbr.rel (%p823_p5) target bundleno = 86 (0x56), region = 28  ;;  %s839_s25 = sand.u32 (!%p823_p5), 1, %s690_s10  }
  0x34   : > { %s466_s18 = sshll.u32 (!%p823_p5), %s839_s25, 5  ;;  %s194_s19 = scalar_lea.sflag (!%p823_p5), [#allocation3], %s839_s25 }
  0x35   : > { %s197_s20 = scalar_lea.vmem (!%p823_p5), [#allocation2], %s466_s18 }
  0x38   : > { %673 = dma.done.wait (%p778_p8), %s194_s19, 512  }
  0x39   : > { %675 = vsyncadd (%p778_p8), %s194_s19, 4294966784  ;;  %s467_s5 = sshll.u32 %s839_s25, 3  ;;  %s203_s26 = scalar_lea.sflag [#allocation6], %s839_s25 }
  0x3a   : > { %s206_s27 = scalar_lea.vmem [#allocation5], %s467_s5 }
  0x3b   : > { %677 = dma.done.wait (%p778_p8), %s203_s26, 128  }
  0x3c   : > { %679 = vsyncadd (%p778_p8), %s203_s26, 4294967168  ;;  %s492_s28 = smul.u32 96, %s839_s25  ;;  %v250_v0 = vld [vmem:[%s197_s20] sm:$0xff]  ;;  %v251_v2 = vld [vmem:[%s197_s20 + $0x8] sm:$0xff]  ;;  %v712_v5 = vmov 0.0   ;;  %s713_s30 = smov [#allocation7]  }
  0x3d   : > { %v254_v1 = vld [vmem:[%s206_s27] sm:$0xff]  ;;  %v252_v3 = vld [vmem:[%s197_s20 + $0x10] sm:$0xff]  ;;  %v253_v4 = vld [vmem:[%s197_s20 + $0x18] sm:$0xff]  ;;  %s493_s21 = smul.u32 1536, %s698_s12  ;;  %v275_v14 = vmul.f32 %v250_v0, %v250_v0  ;;  %v276_v15 = vmul.f32 %v251_v2, %v251_v2  ;;  %s326_s12 = scalar_lea.sflag [#allocation4], %s839_s25 }
  0x3e   : > { %vm255_vm0 = vcmp.eq.s32.totalorder %v254_v1, 0  ;;  %vm256_vm1 = vcmp.eq.s32.totalorder %v254_v1, 1  ;;  %vm257_vm2 = vcmp.eq.s32.totalorder %v254_v1, 2  ;;  %vm258_vm3 = vcmp.eq.s32.totalorder %v254_v1, 3  ;;  %s231_s29 = scalar_lea.vmem [#allocation7], %s492_s28  ;;  %s626_s4 = sshll.u32 %s713_s30, 4  ;;  %s627_s4 = int_to_ptr.vmem [resolvable:$false] %s626_s4 }
  0x3f   : > { %v468_v6 = vsel %vm255_vm0, 1.0, %v712_v5  ;;  %v469_v7 = vsel %vm256_vm1, 1.0, %v712_v5  ;;  %v470_v8 = vsel %vm257_vm2, 1.0, %v712_v5  ;;  %v471_v9 = vsel %vm258_vm3, 1.0, %v712_v5  ;;  %s341_s3 = sshll.u32 %s231_s29, 4  ;;  %s858_s15 = scalar_lea.hbm %s910_s2, %s493_s21  ;;  %476 = vst [vmem:[%s231_s29 + $0x20] sm:$0xff] %v275_v14  ;;  %s860_s3 = int_to_ptr.vmem [resolvable:$true] %s341_s3 }
  0x40   : > { %v267_v10 = vmul.f32 %v468_v6, %v250_v0  ;;  %v268_v11 = vmul.f32 %v469_v7, %v251_v2  ;;  %v269_v12 = vmul.f32 %v470_v8, %v252_v3  ;;  %v270_v13 = vmul.f32 %v471_v9, %v253_v4  ;;  %477 = vst [vmem:[%s231_s29 + $0x28] sm:$0xff] %v276_v15  ;;  %s622_s16 = scalar_lea.vmem %s860_s3, 1536  ;;  %s628_s6 = scalar_lea.vmem %s627_s4, 3072 }
  0x41   : > { %v277_v16 = vmul.f32 %v252_v3, %v252_v3  ;;  %v278_v17 = vmul.f32 %v253_v4, %v253_v4  ;;  %484 = vst [vmem:[%s231_s29 + $0x40] sm:$0xff] %v468_v6  ;;  %485 = vst [vmem:[%s231_s29 + $0x48] sm:$0xff] %v469_v7  ;;  %p623_p8 = scmp.ne.s32.totalorder %s860_s3, %s622_s16  ;;  %p629_p5 = scmp.lt.s32.totalorder %s860_s3, %s627_s4 }
  0x42   : > { %295 = vst [vmem:[%s231_s29] sm:$0xff] %v267_v10  ;;  %296 = vst [vmem:[%s231_s29 + $0x8] sm:$0xff] %v268_v11  ;;  %p630_p6 = scmp.lt.s32.totalorder %s628_s6, %s622_s16 }
  0x43   : > { %297 = vst [vmem:[%s231_s29 + $0x10] sm:$0xff] %v269_v12  ;;  %298 = vst [vmem:[%s231_s29 + $0x18] sm:$0xff] %v270_v13  ;;  %p624_p0 = pnand %p623_p8, %p782_p9 }
  0x44   : > { %478 = vst [vmem:[%s231_s29 + $0x30] sm:$0xff] %v277_v16  ;;  %479 = vst [vmem:[%s231_s29 + $0x38] sm:$0xff] %v278_v17  ;;  %p631_p4 = por %p630_p6, %p629_p5 }
  0x45   : > { %486 = vst [vmem:[%s231_s29 + $0x50] sm:$0xff] %v470_v8  ;;  %487 = vst [vmem:[%s231_s29 + $0x58] sm:$0xff] %v471_v9  ;;  %p625_p2 = pneg %p624_p0 }
  0x47   : > { %p632_p7 = pnand %p631_p4, %p625_p2 }
  0x49   : > { %635 = shalt.err (!%p632_p7)
}
  0x4a   : > { %s636_s18 = scalar_lea.hbm %s858_s15, 1536  ;;  %s640_s5 = scalar_lea.hbm %s910_s2, 3072 }
  0x4b   : > { %p637_p1 = scmp.ne.s32.totalorder %s858_s15, %s636_s18  ;;  %p641_p3 = scmp.lt.s32.totalorder %s858_s15, %s910_s2 }
  0x4c   : > { %p642_p8 = scmp.lt.s32.totalorder %s640_s5, %s636_s18 }
  0x4d   : > { %p638_p10 = pnand %p637_p1, %p782_p9 }
  0x4e   : > { %p643_p0 = por %p642_p8, %p641_p3 }
  0x4f   : > { %p639_p13 = pneg %p638_p10 }
  0x51   : > { %p644_p2 = pnand %p643_p0, %p639_p13 }
  0x53   : > { %647 = shalt.err (!%p644_p2)
}
  0x54   : > { %s714_s28 = smov 128   ;;  %s715_s21 = smov 8  }
  0x55   : > { %498 = dma.vmem_to_hbm [thread:$0]  (%p782_p9), %s860_s3, 1536, %s858_s15, %s326_s12, %s714_s28, %s714_s28, %s715_s21  }
  0x56 PF: > { %s356_s29 = sand.u32 1, %s686_s9   ;;  %p508_p5 = pnand %p459_p12, %p789_p11 }
  0x57   : > { %s357_s7 = scalar_lea.sflag [#allocation4], %s356_s29 }
  0x58   : > { %p509_p6 = pneg %p508_p5 }
  0x5a   : > { %681 = dma.done.wait (%p509_p6), %s357_s7, 1536  }
  0x5b   : > { %683 = vsyncadd (%p509_p6), %s357_s7, 4294965760  ;;  %s21_s14 = sadd.s32 1, %s706_s14   ;;  %s917_s9 = smov %s690_s10 }
  0x5c   : > { %p18_p4 = scmp.ge.s32.totalorder %s21_s14, 4   ;;  %s918_s10 = smov %s694_s11 }
  0x5d   : > { %s919_s11 = smov %s787_s23  ;;  %s920_s12 = smov %s702_s13 }
  0x5e   : > { %s921_s13 = smov %s923_s17  ;;  %20 = sbr.rel (!%p18_p4) target bundleno = 8 (0x8), region = 92 }
  0x63   :  { %362 = vsyncpa [#allocation3], 1 }
  0x64   :  { %364 = vsyncpa [#allocation3 + $0x1], 1 }
  0x65   :  { %365 = vsyncpa [#allocation6], 1 }
  0x66   :  { %367 = vsyncpa [#allocation6 + $0x1], 1 }
  0x67   :  { %368 = vsyncpa [#allocation4], 1 }
  0x68   :  { %370 = vsyncpa [#allocation4 + $0x1], 1 }

</bundles_post_ra>
